<compile_context>
chip_gen: v5e
topology: v5e:2x2
jax: 0.10.0
libtpu: 0.0.40
codegen_flags: <defaults>
</compile_context>

<pallas_src>
import jax
import jax.numpy as jnp
from jax.experimental import pallas as pl
from jax.experimental.pallas import tpu as pltpu

# ---- problem sizes for the demo (small, consistent with the module) ----
BATCH = 200        # number of structures after view(-1, F); not a tile multiple
IN_FEATURES = 64   # data[0].extra_features_SOAP.shape[0]
DIM1 = 32          # dim1
FC_COUNT = 2       # fc_count


def _round_up(v, m):
    return ((v + m - 1) // m) * m


def _soap_mlp_kernel(xt_ref, w1t_ref, wlt_ref, w2_ref, b_ref, o_ref):
    """One batch tile of the fused MLP, transposed dataflow (batch on lanes).

    xt_ref : (F, TILE_M)   compute_dtype   x^T, pipelined along the grid
    w1t_ref: (D, F)        compute_dtype   W1^T, resident
    wlt_ref: (fc, D, D)    compute_dtype   Wl^T stack, resident
    w2_ref : (1, D)        compute_dtype   w2 as a row, resident
    b_ref  : (D, fc+2)     f32             biases as columns [b1 | bl_* | b2]
    o_ref  : (1, TILE_M)   f32             lane-dense output row
    """
    fc = wlt_ref.shape[0]
    wdt = w1t_ref.dtype

    # lin1 + ReLU: (D, F) @ (F, M) -> (D, M); bias broadcasts along lanes.
    h = jnp.dot(w1t_ref[...], xt_ref[...], preferred_element_type=jnp.float32)
    h = jnp.maximum(h + b_ref[:, 0:1], 0.0)

    # lin_list: fc x (Linear(D, D) + ReLU), statically unrolled.
    for i in range(fc):
        h = jnp.dot(wlt_ref[i], h.astype(wdt),
                    preferred_element_type=jnp.float32)
        h = jnp.maximum(h + b_ref[:, i + 1:i + 2], 0.0)

    # lin2 (D -> 1): (1, D) @ (D, M) MXU matmul -> lane-dense (1, M).
    y = jnp.dot(w2_ref[...], h.astype(wdt), preferred_element_type=jnp.float32)
    o_ref[...] = (y + b_ref[0:1, fc + 1:fc + 2]).astype(o_ref.dtype)


def soap_forward(x, params, *, tile_m=None, compute_dtype=jnp.bfloat16):
    """x: (N, F) float32.  Returns (N,) float32 (PyTorch view(-1) semantics).

    compute_dtype=jnp.bfloat16 (default): MXU-native, f32 accumulate.
    compute_dtype=jnp.float32: matches the pure-f32 PyTorch module.
    """
    w1, b1, wl, bl, w2, b2 = params
    n, f = x.shape
    d = w1.shape[1]
    fc = wl.shape[0]

    # ---- resident parameter operands, pre-transposed for the (D, M) dataflow ----
    w1t = w1.T.astype(compute_dtype)                               # (D, F)
    wlt = jnp.transpose(wl, (0, 2, 1)).astype(compute_dtype)       # (fc, D, D)
    w2r = w2.reshape(1, d).astype(compute_dtype)                   # (1, D)
    b_cols = jnp.concatenate(
        [b1.reshape(d, 1), bl.T, jnp.full((d, 1), b2, jnp.float32)],
        axis=1).astype(jnp.float32)                                # (D, fc+2)

    # ---- batch tiling: the batch rides the 128-lane axis ----
    # Keep the pipelined streams (x^T double-buffered + output double-buffered)
    # well under the 32 MiB scoped-VMEM default of every generation (v7x has
    # only 64 MiB physical, 32 MiB scoped).
    vmem_budget = 16 * 1024 * 1024
    bytes_per_row = 2 * f * jnp.dtype(compute_dtype).itemsize + 2 * 4
    cap = max(128, (vmem_budget // bytes_per_row) // 128 * 128)

    if tile_m is None:
        target = min(8192, cap)                     # amortize ~0.35us/step overhead
        nblocks = max(1, -(-n // target))           # ceil-div
        tile_m = -(-n // nblocks)                   # balanced blocks, minimal tail pad
    tile_m = _round_up(max(1, int(tile_m)), 128)
    tile_m = int(max(128, min(tile_m, cap, _round_up(n, 128))))

    n_pad = _round_up(n, tile_m)
    xt = x.astype(compute_dtype)
    if n_pad != n:
        xt = jnp.pad(xt, ((0, n_pad - n), (0, 0)))
    xt = xt.T                                                      # (F, n_pad)

    grid = (n_pad // tile_m,)

    out = pl.pallas_call(
        _soap_mlp_kernel,
        out_shape=jax.ShapeDtypeStruct((1, n_pad), jnp.float32),
        grid=grid,
        in_specs=[
            pl.BlockSpec((f, tile_m), lambda i: (0, i)),       # x^T: pipelined rows->lanes
            pl.BlockSpec((d, f), lambda i: (0, 0)),            # W1^T: VMEM resident
            pl.BlockSpec((fc, d, d), lambda i: (0, 0, 0)),     # Wl^T stack: resident
            pl.BlockSpec((1, d), lambda i: (0, 0)),            # w2 row: resident
            pl.BlockSpec((d, fc + 2), lambda i: (0, 0)),       # bias columns: resident
        ],
        out_specs=pl.BlockSpec((1, tile_m), lambda i: (0, i)),  # lane-dense output
        compiler_params=pltpu.CompilerParams(
            # On v7x with a large multi-block grid, CORE_PARALLEL is the real
            # 2-TensorCore lever; plain "parallel" is a safe no-op elsewhere.
            dimension_semantics=("parallel",)),
    )(xt, w1t, wlt, w2r, b_cols)

    # PyTorch: if out.shape[1] == 1: return out.view(-1)
    return out.reshape(-1)[:n]


def init_params(key):
    """Deterministic, PyTorch-Linear-like init (uniform +/- 1/sqrt(fan_in)).

    Weights are stored as (in_features, out_features)."""
    ks = jax.random.split(key, 6)

    def unif(k, shape, fan_in):
        bound = 1.0 / jnp.sqrt(jnp.float32(fan_in))
        return jax.random.uniform(k, shape, jnp.float32, -bound, bound)

    w1 = unif(ks[0], (IN_FEATURES, DIM1), IN_FEATURES)
    b1 = unif(ks[1], (DIM1,), IN_FEATURES)
    wl = unif(ks[2], (FC_COUNT, DIM1, DIM1), DIM1)
    bl = unif(ks[3], (FC_COUNT, DIM1), DIM1)
    w2 = unif(ks[4], (DIM1,), DIM1)
    b2 = unif(ks[5], (), DIM1)
    return w1, b1, wl, bl, w2, b2


def reference_forward(x, params, compute_dtype=jnp.bfloat16):
    """Pure-JAX reference with the SAME precision choices as the kernel.

    With compute_dtype=jnp.float32 this is exactly the PyTorch f32 module."""
    w1, b1, wl, bl, w2, b2 = params
    cd = compute_dtype
    h = jnp.dot(x.astype(cd), w1.astype(cd), preferred_element_type=jnp.float32)
    h = jax.nn.relu(h + b1)
    for i in range(wl.shape[0]):
        h = jnp.dot(h.astype(cd), wl[i].astype(cd),
                    preferred_element_type=jnp.float32)
        h = jax.nn.relu(h + bl[i])
    y = jnp.dot(h.astype(cd), w2.astype(cd),
                preferred_element_type=jnp.float32) + b2
    return y


if __name__ == "__main__":
    key = jax.random.PRNGKey(0)
    kx, kp = jax.random.split(key)

    # data.extra_features_SOAP.view(-1, F)
    x = jax.random.normal(kx, (BATCH, IN_FEATURES), jnp.float32)
    params = init_params(kp)

    # 1) Default config: bf16 compute, N=200 collapses to ONE 256-wide grid step.
    out = soap_forward(x, params)
    out = jax.block_until_ready(out)
    ref_bf16 = reference_forward(x, params, jnp.bfloat16)
    assert out.shape == (BATCH,), out.shape
    assert jnp.allclose(out, ref_bf16, atol=1e-3, rtol=1e-3), float(
        jnp.max(jnp.abs(out - ref_bf16)))

    # 2) Coverage of the multi-block pipelined path + tail padding
    #    (tile_m=128 -> grid of 2; defaults would never pick a tile this small).
    out_mb = soap_forward(x, params, tile_m=128)
    out_mb = jax.block_until_ready(out_mb)
    assert jnp.allclose(out_mb, ref_bf16, atol=1e-3, rtol=1e-3), float(
        jnp.max(jnp.abs(out_mb - ref_bf16)))

    # 3) f32 compute path: matches the pure-f32 PyTorch module semantics.
    out_f32 = soap_forward(x, params, compute_dtype=jnp.float32)
    out_f32 = jax.block_until_ready(out_f32)
    ref_f32 = reference_forward(x, params, jnp.float32)
    assert jnp.allclose(out_f32, ref_f32, atol=1e-4, rtol=1e-4), float(
        jnp.max(jnp.abs(out_f32 - ref_f32)))

    print("KERNEL_OK")
</pallas_src>

<mosaic_0001>
module attributes {stable_mosaic.version = 11 : i64} {
  func.func @_soap_mlp_kernel(%arg0: i32, %arg1: memref<64x256xbf16, #tpu.memory_space<vmem>>, %arg2: memref<32x64xbf16, #tpu.memory_space<vmem>>, %arg3: memref<2x32x32xbf16, #tpu.memory_space<vmem>>, %arg4: memref<1x32xbf16, #tpu.memory_space<vmem>>, %arg5: memref<32x4xf32, #tpu.memory_space<vmem>>, %arg6: memref<1x256xf32, #tpu.memory_space<vmem>>) attributes {dimension_semantics = [#tpu.dimension_semantics<parallel>], iteration_bounds = array<i64: 1>, scalar_prefetch = 0 : i64, scratch_operands = 0 : i64, tpu.core_type = #tpu.core_type<tc>, window_params = [{transform_indices = @transform_0, window_bounds = array<i64: 64, 256>}, {pipeline_mode = #tpu.pipeline_mode<synchronous>, transform_indices = @transform_1, window_bounds = array<i64: 32, 64>}, {pipeline_mode = #tpu.pipeline_mode<synchronous>, transform_indices = @transform_2, window_bounds = array<i64: 2, 32, 32>}, {pipeline_mode = #tpu.pipeline_mode<synchronous>, transform_indices = @transform_3, window_bounds = array<i64: 1, 32>}, {pipeline_mode = #tpu.pipeline_mode<synchronous>, transform_indices = @transform_4, window_bounds = array<i64: 32, 4>}, {transform_indices = @transform_5, window_bounds = array<i64: 1, 256>}]} {
    %c0 = arith.constant 0 : index
    %c0_0 = arith.constant 0 : index
    %0 = vector.load %arg2[%c0, %c0_0] : memref<32x64xbf16, #tpu.memory_space<vmem>>, vector<32x64xbf16>
    %c0_1 = arith.constant 0 : index
    %c0_2 = arith.constant 0 : index
    %1 = vector.load %arg1[%c0_1, %c0_2] : memref<64x256xbf16, #tpu.memory_space<vmem>>, vector<64x256xbf16>
    %cst = arith.constant dense<0.000000e+00> : vector<32x256xf32>
    %2 = tpu.matmul %0, %1, %cst {dimension_numbers = #tpu.dot_dimension_numbers<[1], [0], [0], [1], [0, 0, 1, 1], [], []>} : vector<32x64xbf16>, vector<64x256xbf16>, vector<32x256xf32> -> vector<32x256xf32>
    %c0_3 = arith.constant 0 : index
    %c0_4 = arith.constant 0 : index
    %3 = vector.load %arg5[%c0_3, %c0_4] : memref<32x4xf32, #tpu.memory_space<vmem>>, vector<32x1xf32>
    %4 = vector.broadcast %3 : vector<32x1xf32> to vector<32x256xf32>
    %5 = arith.addf %2, %4 : vector<32x256xf32>
    %cst_5 = arith.constant 0.000000e+00 : f32
    %6 = vector.broadcast %cst_5 : f32 to vector<32x256xf32>
    %7 = arith.maximumf %5, %6 : vector<32x256xf32>
    %c0_6 = arith.constant 0 : index
    %c0_7 = arith.constant 0 : index
    %c0_8 = arith.constant 0 : index
    %8 = vector.load %arg3[%c0_6, %c0_7, %c0_8] : memref<2x32x32xbf16, #tpu.memory_space<vmem>>, vector<1x32x32xbf16>
    %9 = vector.shape_cast %8 : vector<1x32x32xbf16> to vector<32x32xbf16>
    %10 = arith.truncf %7 : vector<32x256xf32> to vector<32x256xbf16>
    %cst_9 = arith.constant dense<0.000000e+00> : vector<32x256xf32>
    %11 = tpu.matmul %9, %10, %cst_9 {dimension_numbers = #tpu.dot_dimension_numbers<[1], [0], [0], [1], [0, 0, 1, 1], [], []>} : vector<32x32xbf16>, vector<32x256xbf16>, vector<32x256xf32> -> vector<32x256xf32>
    %c0_10 = arith.constant 0 : index
    %c1 = arith.constant 1 : index
    %12 = vector.load %arg5[%c0_10, %c1] : memref<32x4xf32, #tpu.memory_space<vmem>>, vector<32x1xf32>
    %13 = vector.broadcast %12 : vector<32x1xf32> to vector<32x256xf32>
    %14 = arith.addf %11, %13 : vector<32x256xf32>
    %cst_11 = arith.constant 0.000000e+00 : f32
    %15 = vector.broadcast %cst_11 : f32 to vector<32x256xf32>
    %16 = arith.maximumf %14, %15 : vector<32x256xf32>
    %c1_12 = arith.constant 1 : index
    %c0_13 = arith.constant 0 : index
    %c0_14 = arith.constant 0 : index
    %17 = vector.load %arg3[%c1_12, %c0_13, %c0_14] : memref<2x32x32xbf16, #tpu.memory_space<vmem>>, vector<1x32x32xbf16>
    %18 = vector.shape_cast %17 : vector<1x32x32xbf16> to vector<32x32xbf16>
    %19 = arith.truncf %16 : vector<32x256xf32> to vector<32x256xbf16>
    %cst_15 = arith.constant dense<0.000000e+00> : vector<32x256xf32>
    %20 = tpu.matmul %18, %19, %cst_15 {dimension_numbers = #tpu.dot_dimension_numbers<[1], [0], [0], [1], [0, 0, 1, 1], [], []>} : vector<32x32xbf16>, vector<32x256xbf16>, vector<32x256xf32> -> vector<32x256xf32>
    %c0_16 = arith.constant 0 : index
    %c2 = arith.constant 2 : index
    %21 = vector.load %arg5[%c0_16, %c2] : memref<32x4xf32, #tpu.memory_space<vmem>>, vector<32x1xf32>
    %22 = vector.broadcast %21 : vector<32x1xf32> to vector<32x256xf32>
    %23 = arith.addf %20, %22 : vector<32x256xf32>
    %cst_17 = arith.constant 0.000000e+00 : f32
    %24 = vector.broadcast %cst_17 : f32 to vector<32x256xf32>
    %25 = arith.maximumf %23, %24 : vector<32x256xf32>
    %c0_18 = arith.constant 0 : index
    %c0_19 = arith.constant 0 : index
    %26 = vector.load %arg4[%c0_18, %c0_19] : memref<1x32xbf16, #tpu.memory_space<vmem>>, vector<1x32xbf16>
    %27 = arith.truncf %25 : vector<32x256xf32> to vector<32x256xbf16>
    %cst_20 = arith.constant dense<0.000000e+00> : vector<1x256xf32>
    %28 = tpu.matmul %26, %27, %cst_20 {dimension_numbers = #tpu.dot_dimension_numbers<[1], [0], [0], [1], [0, 0, 1, 1], [], []>} : vector<1x32xbf16>, vector<32x256xbf16>, vector<1x256xf32> -> vector<1x256xf32>
    %c0_21 = arith.constant 0 : index
    %c3 = arith.constant 3 : index
    %29 = vector.load %arg5[%c0_21, %c3] : memref<32x4xf32, #tpu.memory_space<vmem>>, vector<1x1xf32>
    %30 = vector.broadcast %29 : vector<1x1xf32> to vector<1x256xf32>
    %31 = arith.addf %28, %30 : vector<1x256xf32>
    %c0_22 = arith.constant 0 : index
    %c0_23 = arith.constant 0 : index
    %32 = vector.load %arg6[%c0_22, %c0_23] : memref<1x256xf32, #tpu.memory_space<vmem>>, vector<1x256xf32>
    tpu.vector_store %arg6[%c0_22, %c0_23], %31 {strides = array<i32>} : memref<1x256xf32, #tpu.memory_space<vmem>>, vector<1x256xf32>,
    return
  }
  func.func @transform_0(%arg0: i32) -> (i32, i32) {
    %c0_i32 = arith.constant 0 : i32
    %c0_i32_0 = arith.constant 0 : i32
    return %c0_i32, %arg0 : i32, i32
  }
  func.func @transform_1(%arg0: i32) -> (i32, i32) {
    %c0_i32 = arith.constant 0 : i32
    %c0_i32_0 = arith.constant 0 : i32
    %c0_i32_1 = arith.constant 0 : i32
    return %c0_i32, %c0_i32_0 : i32, i32
  }
  func.func @transform_2(%arg0: i32) -> (i32, i32, i32) {
    %c0_i32 = arith.constant 0 : i32
    %c0_i32_0 = arith.constant 0 : i32
    %c0_i32_1 = arith.constant 0 : i32
    %c0_i32_2 = arith.constant 0 : i32
    return %c0_i32, %c0_i32_0, %c0_i32_1 : i32, i32, i32
  }
  func.func @transform_3(%arg0: i32) -> (i32, i32) {
    %c0_i32 = arith.constant 0 : i32
    %c0_i32_0 = arith.constant 0 : i32
    %c0_i32_1 = arith.constant 0 : i32
    return %c0_i32, %c0_i32_0 : i32, i32
  }
  func.func @transform_4(%arg0: i32) -> (i32, i32) {
    %c0_i32 = arith.constant 0 : i32
    %c0_i32_0 = arith.constant 0 : i32
    %c0_i32_1 = arith.constant 0 : i32
    return %c0_i32, %c0_i32_0 : i32, i32
  }
  func.func @transform_5(%arg0: i32) -> (i32, i32) {
    %c0_i32 = arith.constant 0 : i32
    %c0_i32_0 = arith.constant 0 : i32
    return %c0_i32, %arg0 : i32, i32
  }
}

</mosaic_0001>

<bundles_post_ra>
// kernel: tpu_custom_call.1
= control target key start
LH: loop header
LB: loop body
LE: loop exit
PB: predicated region body
PF: predicated region fallthrough
CT: control target
= control target key end

     0   :  { %10 = vsyncpa [#allocation3], 0  ;;  %s733_s0 = inlined_call_operand.hbm [shape: bf16[64,256], index: 0, kind: input, shape index: {}]   ;;  %s734_s1 = inlined_call_operand.hbm [shape: bf16[32,64], index: 1, kind: input, shape index: {}]   ;;  %s735_s2 = inlined_call_operand.vmem [shape: bf16[2,32,32], index: 2, kind: input, shape index: {}]   ;;  %s736_s3 = inlined_call_operand.vmem [shape: bf16[1,32], index: 3, kind: input, shape index: {}]   ;;  %s737_s4 = inlined_call_operand.vmem [shape: f32[32,4], index: 4, kind: input, shape index: {}]   ;;  %s738_s5 = inlined_call_operand.hbm [shape: f32[1,256], index: 5, kind: output, shape index: {}]  }
   0x1   :  { %11 = vsyncpa [#allocation6], 0 }
   0x2   :  { %12 = vsyncpa [#allocation4], 0  ;;  %s17_s20 = sshll.u32 %s733_s0, 4  ;;  %s623_s21 = smov [#allocation2]   ;;  %s18_s20 = int_to_ptr.hbm [resolvable:$true] %s17_s20 }
   0x3   :  { %s19_s22 = sshll.u32 %s623_s21, 4  ;;  %s30_s25 = sshll.u32 %s734_s1, 4  ;;  %s20_s22 = int_to_ptr.vmem [resolvable:$true] %s19_s22  ;;  %s31_s25 = int_to_ptr.hbm [resolvable:$true] %s30_s25 }
   0x4   :  { %s624_s26 = smov 128   ;;  %s625_s27 = smov 8  }
   0x5   :  { %25 = dma.hbm_to_vmem [thread:$0]  %s18_s20, 1024, %s20_s22, [#allocation3], %s624_s26, %s624_s26, %s625_s27  }
   0x6   :  { %s626_s28 = smov [#allocation5]   ;;  %s627_s30 = smov 64  }
   0x7   :  { %s32_s29 = sshll.u32 %s626_s28, 4  ;;  %s628_s6 = smov 4   ;;  %s33_s29 = int_to_ptr.vmem [resolvable:$true] %s32_s29 }
   0x8   :  { %38 = dma.hbm_to_vmem [thread:$0]  %s31_s25, 256, %s33_s29, [#allocation6], %s627_s30, %s627_s30, %s628_s6  }
   0x9   :  { %617 = dma.done.wait [#allocation3], 1024  }
   0xa   :  { %618 = vsyncadd [#allocation3], 4294966272 }
   0xb   :  { %619 = dma.done.wait [#allocation6], 256  }
   0xc   :  { %620 = vsyncadd [#allocation6], 4294967040  ;;  %v629_v0 = vmov 0   ;;  %v470_v1 = vld [vmem:[#allocation2 + $0x30] sm:$0xf]  ;;  %v673_v17 = vld [vmem:[%s737_s4] sm:$0xff] }
   0xd   :  { %536 = vset.pattern.permute.xlu1 %v629_v0  ;;  %535 = vset.pattern.permute.xlu0 %v629_v0  ;;  %v519_v2 = vld [vmem:[#allocation2 + $0x34] sm:$0xf0]  ;;  %v518_v3 = vld [vmem:[#allocation2 + $0x34] sm:$0xf]  ;;  %v472_v5 = vld [vmem:[#allocation2 + $0x38] sm:$0xf0] }
   0xe   :  { %v471_v4 = vor.u32 %v519_v2, %v470_v1  ;;  %v462_v6 = vld [vmem:[#allocation2 + $0x20] sm:$0xf]  ;;  %v517_v7 = vld [vmem:[#allocation2 + $0x24] sm:$0xf0]  ;;  %v475_v8 = vor.u32 %v518_v3, %v472_v5  ;;  %v516_v9 = vld [vmem:[#allocation2 + $0x24] sm:$0xf]  ;;  %72 = vperm.xlu1 %536, %v673_v17  }
   0xf   :  { %v464_v10 = vld [vmem:[#allocation2 + $0x28] sm:$0xf0]  ;;  %v463_v11 = vor.u32 %v517_v7, %v462_v6  ;;  %v454_v13 = vld [vmem:[#allocation2 + $0x10] sm:$0xf]  ;;  %v515_v14 = vld [vmem:[#allocation2 + $0x14] sm:$0xf0] }
  0x10   :  { %151 = vmatpush.bf16.msra.mxu0 %v471_v4  ;;  %170 = vmatpush.bf16.msra.mxu1 %v475_v8  ;;  %v467_v12 = vor.u32 %v516_v9, %v464_v10  ;;  %v514_v15 = vld [vmem:[#allocation2 + $0x14] sm:$0xf]  ;;  %v456_v16 = vld [vmem:[#allocation2 + $0x18] sm:$0xf0]  ;;  %v455_v19 = vor.u32 %v515_v14, %v454_v13  ;;  %v446_v21 = vld [vmem:[#allocation2] sm:$0xf] }
  0x11   :  { %v679_v18 = vld [vmem:[%s737_s4 + $0x10] sm:$0xff]  ;;  %v459_v20 = vor.u32 %v514_v15, %v456_v16  ;;  %v513_v22 = vld [vmem:[#allocation2 + $0x4] sm:$0xf0]  ;;  %v512_v23 = vld [vmem:[#allocation2 + $0x4] sm:$0xf]  ;;  %vm140_vm0 = vcmask 523264  }
  0x12   :  { %82 = vperm.xlu0 %535, %v679_v18   ;;  %v448_v24 = vld [vmem:[#allocation2 + $0x8] sm:$0xf0]  ;;  %v447_v25 = vor.u32 %v513_v22, %v446_v21  ;;  %v690_v28 = vld [vmem:[%s737_s4 + $0x18] sm:$0xff]  ;;  %v510_v29 = vld [vmem:[#allocation5] sm:$0xff]  ;;  %v630_v34 = vmov 1   ;;  %vm227_vm1 = vcmask 261120  }
  0x13   :  { %v685_v26 = vld [vmem:[%s737_s4 + $0x8] sm:$0xff]  ;;  %v451_v27 = vor.u32 %v512_v23, %v448_v24  ;;  %537 = vset.pattern.permute.xlu2 %v630_v34  ;;  %v520_v0 = vld [vmem:[%s735_s2] sm:$0xff]  ;;  %v631_v15 = vmov 2   ;;  %s633_s23 = smov [#allocation7]   ;;  %s425_s27 = sshll.u32 %s738_s5, 4  ;;  %vm410_vm2 = vcmask 1040384   ;;  %s426_s27 = int_to_ptr.hbm [resolvable:$true] %s425_s27 }
  0x14   :  { %152 = vmatpush.bf16.msra.mxu0 %v463_v11  ;;  %171 = vmatpush.bf16.msra.mxu1 %v467_v12  ;;  %v511_v30 = vld [vmem:[#allocation5 + $0x8] sm:$0xff]  ;;  %s423_s24 = sshll.u32 %s633_s23, 4  ;;  %s424_s24 = int_to_ptr.vmem [resolvable:$true] %s423_s24 }
  0x15   :  { %210 = vperm.xlu2 %537, %v679_v18   ;;  %v521_v1 = vld [vmem:[%s735_s2 + $0x8] sm:$0xff] }
  0x16   :  { %77 = vperm.xlu1 %536, %v685_v26  }
  0x18   :  { %153 = vmatpush.bf16.msra.mxu0 %v455_v19  ;;  %172 = vmatpush.bf16.msra.mxu1 %v459_v20 }
  0x1a   :  { %87 = vperm.xlu0 %535, %v690_v28  }
  0x1c   :  { %154 = vmatpush.bf16.msra.mxu0 %v447_v25  ;;  %173 = vmatpush.bf16.msra.mxu1 %v451_v27 }
  0x1d   :  { %214 = vperm.xlu2 %537, %v690_v28  }
  0x1e   :  { %539 = vset.pattern.permute.xlu1 %v630_v34 }
  0x1f   :  { %476 = vmatmul.msk.bf16.vlgmr.msra.gmra.mxu0 %vm140_vm0, %v510_v29  ;;  %478 = vmatmul.msk.bf16.vlgmr.msra.gmra.mxu1 %vm140_vm0, %v510_v29 }
  0x20   :  { %206 = vperm.xlu1 %539, %v685_v26  }
  0x22   :  { %538 = vset.pattern.permute.xlu0 %v630_v34 }
  0x23   :  { %202 = vperm.xlu0 %538, %v673_v17  }
  0x25   :  { %540 = vset.pattern.permute.xlu2 %v631_v15 }
  0x26   :  { %298 = vperm.xlu2 %540, %v679_v18  }
  0x28   :  { %541 = vset.pattern.permute.xlu1 %v631_v15 }
  0x29   :  { %302 = vperm.xlu1 %541, %v690_v28   ;;  %v523_v28 = vld [vmem:[%s735_s2 + $0x18] sm:$0xff] }
  0x2b   :  { %542 = vset.pattern.permute.xlu0 %v631_v15 }
  0x2c   :  { %294 = vperm.xlu0 %542, %v685_v26  }
  0x2e   :  { %290 = vperm.xlu2 %540, %v673_v17  }
  0x2f   :  { %477 = vmatmul.msk.bf16.gmra.mxu0 %vm140_vm0, %v511_v30  ;;  %479 = vmatmul.msk.bf16.gmra.mxu1 %vm140_vm0, %v511_v30 }
  0x6f   :  { %v211_v6 = vpop.permute.xlu2 %210 }
  0x77   :  { %v215_v12 = vpop.permute.xlu2 %214 }
  0x80   :  { %v73_v36 = vpop.permute.xlu1 %72 }
  0x84   :  { %v83_v37 = vpop.permute.xlu0 %82 }
  0x88   :  { %v78_v40 = vpop.permute.xlu1 %77 }
  0x8c   :  { %v88_v42 = vpop.permute.xlu0 %87 }
  0x92   :  { %v207_v9 = vpop.permute.xlu1 %206 }
  0x95   :  { %v203_v10 = vpop.permute.xlu0 %202 }
  0x9c   :  { %v156_v31 = vpop.f32.mrf.mxu0  ;;  %v175_v32 = vpop.f32.mrf.mxu1 }
  0x9d   :  { %v157_v50 = vadd.f32 %v156_v31, %v73_v36  ;;  %v176_v53 = vadd.f32 %v175_v32, %v73_v36 }
  0x9f   :  { %v185_v60 = vmax.f32 %v157_v50, 0.0  ;;  %v186_v61 = vmax.f32 %v176_v53, 0.0 }
  0xa4   :  { %v158_v33 = vpop.f32.mrf.mxu0  ;;  %v177_v35 = vpop.f32.mrf.mxu1 }
  0xa5   :  { %v159_v45 = vadd.f32 %v158_v33, %v78_v40  ;;  %v178_v48 = vadd.f32 %v177_v35, %v78_v40 }
  0xa7   :  { %v187_v56 = vmax.f32 %v159_v45, 0.0  ;;  %v188_v58 = vmax.f32 %v178_v48, 0.0 }
  0xa9   :  { %v197_v62 = vpack.c.bf16 %v187_v56, %v185_v60  ;;  %v198_v63 = vpack.c.bf16 %v188_v58, %v186_v61 }
  0xac   :  { %v161_v38 = vpop.f32.mrf.mxu0  ;;  %v180_v39 = vpop.f32.mrf.mxu1 }
  0xad   :  { %v162_v41 = vadd.f32 %v161_v38, %v83_v37  ;;  %v181_v43 = vadd.f32 %v180_v39, %v83_v37  ;;  %v522_v37 = vld [vmem:[%s735_s2 + $0x10] sm:$0xff]  ;;  %v372_v39 = vld [vmem:[%s737_s4] sm:$0x1] }
  0xaf   :  { %v189_v51 = vmax.f32 %v162_v41, 0.0  ;;  %v190_v54 = vmax.f32 %v181_v43, 0.0  ;;  %v632_v41 = vmov 3   ;;  %v299_v43 = vpop.permute.xlu2 %298 }
  0xb0   :  { %543 = vset.pattern.permute.xlu1 %v632_v41  ;;  %544 = vset.pattern.permute.xlu0 %v632_v41 }
  0xb1   :  { %375 = vperm.xlu1 %543, %v372_v39  }
  0xb4   :  { %v163_v44 = vpop.f32.mrf.mxu0  ;;  %v182_v47 = vpop.f32.mrf.mxu1 }
  0xb5   :  { %v164_v46 = vadd.f32 %v163_v44, %v88_v42  ;;  %v183_v49 = vadd.f32 %v182_v47, %v88_v42  ;;  %v303_v47 = vpop.permute.xlu1 %302 }
  0xb7   :  { %v191_v52 = vmax.f32 %v164_v46, 0.0  ;;  %v192_v55 = vmax.f32 %v183_v49, 0.0  ;;  %v295_v46 = vpop.permute.xlu0 %294  ;;  %v291_v49 = vpop.permute.xlu2 %290 }
  0xb9   :  { %v199_v57 = vpack.c.bf16 %v191_v52, %v189_v51  ;;  %v200_v59 = vpack.c.bf16 %v192_v55, %v190_v54 }
  0xbb   :  { %240 = vmatpush.bf16.msra.mxu2 %v199_v57  ;;  %259 = vmatpush.bf16.msra.mxu3 %v200_v59 }
  0xbf   :  { %241 = vmatpush.bf16.msra.mxu2 %v197_v62  ;;  %260 = vmatpush.bf16.msra.mxu3 %v198_v63 }
  0xc2   :  { %488 = vmatmul.msk.bf16.vlgmr.msra.gmra.mxu2 %vm227_vm1, %v520_v0  ;;  %490 = vmatmul.msk.bf16.vlgmr.msra.gmra.mxu3 %vm227_vm1, %v520_v0 }
  0xd2   :  { %489 = vmatmul.msk.bf16.gmra.mxu2 %vm227_vm1, %v521_v1  ;;  %491 = vmatmul.msk.bf16.gmra.mxu3 %vm227_vm1, %v521_v1 }
 0x145   :  { %v243_v2 = vpop.f32.mrf.mxu2  ;;  %v262_v3 = vpop.f32.mrf.mxu3 }
 0x146   :  { %v244_v23 = vadd.f32 %v243_v2, %v203_v10  ;;  %v263_v27 = vadd.f32 %v262_v3, %v203_v10  ;;  %v413_v10 = vlaneseq }
 0x148   :  { %v272_v35 = vmax.f32 %v244_v23, 0.0  ;;  %v273_v26 = vmax.f32 %v263_v27, 0.0  ;;  %vm415_vm3 = vcmp.lt.s32.totalorder %v413_v10, 256 }
 0x14d   :  { %v245_v4 = vpop.f32.mrf.mxu2  ;;  %v264_v5 = vpop.f32.mrf.mxu3 }
 0x14e   :  { %v246_v16 = vadd.f32 %v245_v4, %v207_v9  ;;  %v265_v21 = vadd.f32 %v264_v5, %v207_v9 }
 0x150   :  { %v274_v31 = vmax.f32 %v246_v16, 0.0  ;;  %v275_v33 = vmax.f32 %v265_v21, 0.0 }
 0x152   :  { %v285_v18 = vpack.c.bf16 %v274_v31, %v272_v35  ;;  %v286_v36 = vpack.c.bf16 %v275_v33, %v273_v26 }
 0x155   :  { %v248_v7 = vpop.f32.mrf.mxu2  ;;  %v267_v8 = vpop.f32.mrf.mxu3 }
 0x156   :  { %v249_v11 = vadd.f32 %v248_v7, %v211_v6  ;;  %v268_v13 = vadd.f32 %v267_v8, %v211_v6  ;;  %v367_v7 = vld [vmem:[%s736_s3] sm:$0x1]  ;;  %v376_v8 = vpop.permute.xlu1 %375 }
 0x158   :  { %v276_v24 = vmax.f32 %v249_v11, 0.0  ;;  %v277_v29 = vmax.f32 %v268_v13, 0.0 }
 0x15d   :  { %v250_v14 = vpop.f32.mrf.mxu2  ;;  %v269_v20 = vpop.f32.mrf.mxu3 }
 0x15e   :  { %v251_v19 = vadd.f32 %v250_v14, %v215_v12  ;;  %v270_v22 = vadd.f32 %v269_v20, %v215_v12 }
 0x160   :  { %v278_v25 = vmax.f32 %v251_v19, 0.0  ;;  %v279_v30 = vmax.f32 %v270_v22, 0.0 }
 0x162   :  { %v287_v32 = vpack.c.bf16 %v278_v25, %v276_v24  ;;  %v288_v34 = vpack.c.bf16 %v279_v30, %v277_v29 }
 0x164   :  { %327 = vmatpush.bf16.msrb.mxu2 %v287_v32  ;;  %346 = vmatpush.bf16.msrb.mxu3 %v288_v34 }
 0x168   :  { %328 = vmatpush.bf16.msrb.mxu2 %v285_v18  ;;  %347 = vmatpush.bf16.msrb.mxu3 %v286_v36 }
 0x16b   :  { %504 = vmatmul.msk.bf16.vlgmr.msrb.gmra.mxu2 %vm227_vm1, %v522_v37  ;;  %506 = vmatmul.msk.bf16.vlgmr.msrb.gmra.mxu3 %vm227_vm1, %v522_v37 }
 0x17b   :  { %505 = vmatmul.msk.bf16.gmra.mxu2 %vm227_vm1, %v523_v28  ;;  %507 = vmatmul.msk.bf16.gmra.mxu3 %vm227_vm1, %v523_v28 }
 0x1ee   :  { %v330_v17 = vpop.f32.mrf.mxu2  ;;  %v349_v38 = vpop.f32.mrf.mxu3 }
 0x1ef   :  { %v331_v57 = vadd.f32 %v330_v17, %v291_v49  ;;  %v350_v60 = vadd.f32 %v349_v38, %v291_v49 }
 0x1f1   :  { %v359_v3 = vmax.f32 %v331_v57, 0.0  ;;  %v360_v4 = vmax.f32 %v350_v60, 0.0 }
 0x1f6   :  { %v332_v40 = vpop.f32.mrf.mxu2  ;;  %v351_v42 = vpop.f32.mrf.mxu3 }
 0x1f7   :  { %v333_v52 = vadd.f32 %v332_v40, %v295_v46  ;;  %v352_v55 = vadd.f32 %v351_v42, %v295_v46 }
 0x1f9   :  { %v361_v63 = vmax.f32 %v333_v52, 0.0  ;;  %v362_v1 = vmax.f32 %v352_v55, 0.0 }
 0x1fb   :  { %v368_v5 = vpack.c.bf16 %v361_v63, %v359_v3  ;;  %v369_v6 = vpack.c.bf16 %v362_v1, %v360_v4 }
 0x1fe   :  { %v335_v44 = vpop.f32.mrf.mxu2  ;;  %v354_v45 = vpop.f32.mrf.mxu3 }
 0x1ff   :  { %v336_v48 = vadd.f32 %v335_v44, %v299_v43  ;;  %v355_v50 = vadd.f32 %v354_v45, %v299_v43 }
 0x201   :  { %v363_v58 = vmax.f32 %v336_v48, 0.0  ;;  %v364_v61 = vmax.f32 %v355_v50, 0.0 }
 0x206   :  { %v337_v51 = vpop.f32.mrf.mxu2  ;;  %v356_v54 = vpop.f32.mrf.mxu3 }
 0x207   :  { %v338_v53 = vadd.f32 %v337_v51, %v303_v47  ;;  %v357_v56 = vadd.f32 %v356_v54, %v303_v47 }
 0x209   :  { %v365_v59 = vmax.f32 %v338_v53, 0.0  ;;  %v366_v62 = vmax.f32 %v357_v56, 0.0 }
 0x20b   :  { %v370_v0 = vpack.c.bf16 %v365_v59, %v363_v58  ;;  %v371_v2 = vpack.c.bf16 %v366_v62, %v364_v61 }
 0x20d   :  { %387 = vmatpush.bf16.msrb.mxu0 %v370_v0  ;;  %400 = vmatpush.bf16.msrb.mxu1 %v371_v2 }
 0x211   :  { %388 = vmatpush.bf16.msrb.mxu0 %v368_v5  ;;  %401 = vmatpush.bf16.msrb.mxu1 %v369_v6 }
 0x214   :  { %508 = vmatmul.msk.bf16.vlgmr.msrb.gmra.mxu0 %vm227_vm1, %v367_v7  ;;  %509 = vmatmul.msk.bf16.vlgmr.msrb.gmra.mxu1 %vm227_vm1, %v367_v7 }
 0x291   :  { %v390_v9 = vpop.f32.mrf.mxu0  ;;  %v403_v11 = vpop.f32.mrf.mxu1 }
 0x292   :  { %v404_v12 = vadd.f32 %v403_v11, %v376_v8  ;;  %v391_v13 = vadd.f32 %v390_v9, %v376_v8 }
 0x294   :  { %v409_v14 = vrot.slane %v404_v12, 7 }
 0x296   :  { %v411_v15 = vsel %vm410_vm2, %v391_v13, %v409_v14 }
 0x297   :  { %417 = vst.msk [vmem:[#allocation7] sm:$0x3] %vm415_vm3, %v411_v15 }
 0x298   :  { %428 = dma.vmem_to_hbm [thread:$0]  %s424_s24, 32, %s426_s27, [#allocation4]  }
 0x299   :  { %v392_v16 = vpop.f32.mrf.mxu0  ;;  %v405_v19 = vpop.f32.mrf.mxu1 }
 0x29a   :  { %621 = dma.done.wait [#allocation4], 32  }
 0x29b   :  { %622 = vsyncadd [#allocation4], 4294967264 }
 0x29c   :  { %433 = vsyncpa [#allocation3], 1 }
 0x29d   :  { %434 = vsyncpa [#allocation6], 1 }
 0x29e   :  { %435 = vsyncpa [#allocation4], 1 }

</bundles_post_ra>
